<compile_context>
chip_gen: v5e
topology: v5e:2x2
jax: 0.10.0
libtpu: 0.0.40
codegen_flags: <defaults>
</compile_context>

<pallas_src>
import jax
import jax.numpy as jnp
from jax.experimental import pallas as pl
from jax.experimental.pallas import tpu as pltpu

LANE = 128
_PROJ_ROWS = 1024          # row-chunk bound for the hoisted input projection
_VMEM_BUDGET = 40 << 20    # tile-sizing budget; leaves headroom on v7x (64 MiB/TC)


def _round_up(x, m):
    return ((x + m - 1) // m) * m


def _proj_chunk_t(T, TB):
    return max(1, min(T, max(1, _PROJ_ROWS // TB)))


def _vmem_bytes(T, TB, E, Gp, Hg, F1):
    """Rough per-grid-step VMEM footprint (bytes), used for tile sizing + limits."""
    tc = _proj_chunk_t(T, TB)
    emb_blk = T * TB * E * 2 * 2                        # bf16 activation block, double-buffered
    gx = T * TB * Gp * 2                                # bf16 hoisted-gates scratch
    out_blk = TB * LANE * 4 * 2
    weights = 2 * ((E * Gp + Hg * Gp + Hg * F1 + F1 * LANE) * 2
                   + (Gp + F1 + LANE) * 4)
    work = T * TB * E * 4 + tc * TB * (E + Gp) * 4 + 4 * TB * Gp * 4
    return emb_blk + gx + out_blk + weights + work


def _pick_tb(B, T, E, Gp, Hg, F1, block_b):
    TB = min(block_b, _round_up(B, 8))
    if B > 8:
        # Keep >=2 batch tiles so the "parallel" grid axis can shard across 2 TCs (v7x).
        TB = min(TB, _round_up((B + 1) // 2, 8))
    TB = max(8, TB)
    while TB > 8 and _vmem_bytes(T, TB, E, Gp, Hg, F1) > _VMEM_BUDGET:
        TB = max(8, _round_up(TB // 2, 8))
    return TB


def rnn_forward_kernel(emb_ref, wih_ref, whh_ref, b_ref,
                       wfc1_ref, bfc1_ref, wfc2_ref, bfc2_ref,
                       out_ref, gx_ref):
    T, TB, E = emb_ref.shape          # time-major activation tile (bf16)
    Gp = wih_ref.shape[1]             # packed/padded gate width (multiple of 128)
    Hg = whh_ref.shape[0]             # per-gate stride == carry width
    packed = (4 * Hg <= LANE)         # small-H: 4 gates share one 128-lane tile

    # --- F.normalize(word_embed): p=2 over dim=1 (the T axis -> axis 0 here), eps=1e-12.
    # rsqrt(max(sq, eps^2)) == 1 / max(||x||, eps); rsqrt goes to the (idle) EUP slot.
    emb = emb_ref[...]                                              # [T, TB, E] bf16
    sq = jnp.sum(jnp.square(emb.astype(jnp.float32)), axis=0, keepdims=True)
    inv = jax.lax.rsqrt(jnp.maximum(sq, 1e-24))                     # [1, TB, E] f32

    # --- Hoisted input projection: MXU matmul(s) for all timesteps, bf16 gx scratch.
    # Chunked over rows so the f32 intermediate stays bounded.
    wih = wih_ref[...]                                              # [E, Gp] bf16
    bias = b_ref[...]                                               # [1, Gp] f32
    tc = _proj_chunk_t(T, TB)
    for t0 in range(0, T, tc):
        ts = min(tc, T - t0)
        xn = (emb_ref[t0:t0 + ts].astype(jnp.float32) * inv).astype(jnp.bfloat16)
        x2d = xn.reshape(ts * TB, E)
        g = jnp.dot(x2d, wih, preferred_element_type=jnp.float32) + bias
        gx_ref[t0 * TB:(t0 + ts) * TB, :] = g.astype(jnp.bfloat16)

    whh = whh_ref[...]                                              # [Hg, Gp] bf16

    # --- LSTM recurrence; PyTorch gate order (i, f, g, o).
    # Two independent half-tile chains interleave MXU / EUP / VPU work per step.
    n_chains = 2 if (TB >= 16 and TB % 16 == 0) else 1
    TBh = TB // n_chains

    def lstm_cell(gates, c):
        if packed:
            # gates: [TBh, Gp] with gate g at lanes [g*Hg, (g+1)*Hg).
            # Activate the whole packed tile (2 dense EUP passes), then extract
            # each gate with an XLU lane-roll + offset-0 slice.
            sig = jax.nn.sigmoid(gates)
            tnh = jnp.tanh(gates)

            def take(act, g):
                off = g * Hg
                if off == 0:
                    return act[:, :Hg]
                return pltpu.roll(act, shift=Gp - off, axis=1)[:, :Hg]

            i_g, f_g = take(sig, 0), take(sig, 1)
            g_g, o_g = take(tnh, 2), take(sig, 3)
        else:
            # Lane-aligned per-gate layout (Hg multiple of 128): plain slices.
            i_g = jax.nn.sigmoid(gates[:, 0 * Hg:1 * Hg])
            f_g = jax.nn.sigmoid(gates[:, 1 * Hg:2 * Hg])
            g_g = jnp.tanh(gates[:, 2 * Hg:3 * Hg])
            o_g = jax.nn.sigmoid(gates[:, 3 * Hg:4 * Hg])
        c = f_g * c + i_g * g_g
        h = o_g * jnp.tanh(c)
        return h, c

    def step(t, carry):
        new = []
        for k, (h, c) in enumerate(carry):
            row = pl.multiple_of(t * TB + k * TBh, 8)
            gx_t = gx_ref[pl.ds(row, TBh), :].astype(jnp.float32)   # [TBh, Gp]
            gates = gx_t + jnp.dot(h.astype(jnp.bfloat16), whh,
                                   preferred_element_type=jnp.float32)
            new.append(lstm_cell(gates, c))
        return tuple(new)

    carry0 = tuple((jnp.zeros((TBh, Hg), jnp.float32),
                    jnp.zeros((TBh, Hg), jnp.float32)) for _ in range(n_chains))
    carry = jax.lax.fori_loop(0, T, step, carry0, unroll=max(1, min(8, T)))
    if n_chains == 1:
        h_last = carry[0][0]
    else:
        h_last = jnp.concatenate([hc[0] for hc in carry], axis=0)   # [TB, Hg]

    # --- head: relu(fc1(h_last)) -> sigmoid(fc2(.)).
    # NOTE: the ln/bn branch in the PyTorch forward is dead code (its result is
    # immediately overwritten by `tmp = relu(fc1(out))`), so it is skipped.
    tmp = jnp.dot(h_last.astype(jnp.bfloat16), wfc1_ref[...],
                  preferred_element_type=jnp.float32) + bfc1_ref[...]
    tmp = jnp.maximum(tmp, 0.0)
    logit = jnp.dot(tmp.astype(jnp.bfloat16), wfc2_ref[...],
                    preferred_element_type=jnp.float32) + bfc2_ref[...]   # [TB, 128]
    out_ref[...] = jax.nn.sigmoid(logit)          # lane-dense full-lane store


def rnn_forward(x_tokens, params, *, block_b=256):
    # TODO(synk): embedding gather stays in XLA glue; an in-kernel scalar-prefetch /
    # DMA gather would save one HBM round-trip of the [B, T, E] activation.
    emb = params["embedding"][x_tokens].astype(jnp.bfloat16)    # [B, T, E] bf16 stream
    emb = jnp.transpose(emb, (1, 0, 2))                         # time-major [T, B, E]
    T, B, E = emb.shape
    Gp = params["w_ih_p"].shape[1]
    Hg = params["w_hh_p"].shape[0]
    F1 = params["w_fc1_p"].shape[1]

    TB = _pick_tb(B, T, E, Gp, Hg, F1, block_b)
    Bp = _round_up(B, TB)
    if Bp != B:
        emb = jnp.pad(emb, ((0, 0), (0, Bp - B), (0, 0)))
    grid = (Bp // TB,)

    est = _vmem_bytes(T, TB, E, Gp, Hg, F1)
    vmem_limit = min(64 << 20, max(32 << 20, int(est * 1.25) + (4 << 20)))

    const2d = lambda i: (0, 0)

    out = pl.pallas_call(
        rnn_forward_kernel,
        out_shape=jax.ShapeDtypeStruct((Bp, LANE), jnp.float32),
        grid_spec=pltpu.PrefetchScalarGridSpec(
            num_scalar_prefetch=0,
            grid=grid,
            in_specs=[
                pl.BlockSpec((T, TB, E), lambda i: (0, i, 0)),       # activations: tiled over batch
                pl.BlockSpec(params["w_ih_p"].shape, const2d),       # weights: VMEM-resident
                pl.BlockSpec(params["w_hh_p"].shape, const2d),
                pl.BlockSpec(params["b_p"].shape, const2d),
                pl.BlockSpec(params["w_fc1_p"].shape, const2d),
                pl.BlockSpec(params["b_fc1_p"].shape, const2d),
                pl.BlockSpec(params["w_fc2_p"].shape, const2d),
                pl.BlockSpec(params["b_fc2_p"].shape, const2d),
            ],
            out_specs=pl.BlockSpec((TB, LANE), lambda i: (i, 0)),
            scratch_shapes=[pltpu.VMEM((T * TB, Gp), jnp.bfloat16)],  # hoisted gates (bf16)
        ),
        compiler_params=pltpu.CompilerParams(
            dimension_semantics=("parallel",),       # megacore/2-TC sharding over batch tiles
            vmem_limit_bytes=vmem_limit,
        ),
    )(
        emb,
        params["w_ih_p"], params["w_hh_p"], params["b_p"],
        params["w_fc1_p"], params["b_fc1_p"],
        params["w_fc2_p"], params["b_fc2_p"],
    )
    return out[:B, 0]                                # .squeeze(1) -> [B]


def init_params(key, word_num, embed_dim, hidden):
    """Torch-equivalent parameters, pre-transposed for `x @ W`.

    Gate layout: gate g lives in columns [g*Hg, g*Hg + H) of a Gp-wide buffer,
    where Hg = H if 4*H <= 128 (packed: all gates in one lane tile) else
    round_up(H, 128) (lane-aligned per-gate).  Zero padding guarantees padded
    hidden lanes stay exactly 0 through the recurrence and the FC head
    (sigmoid(0)*tanh(0) contributions vanish).  Matmul weights are bf16,
    biases stay f32."""
    H = hidden
    Hg = H if 4 * H <= LANE else _round_up(H, LANE)
    Gp = _round_up(4 * Hg, LANE)
    F1 = _round_up(H, LANE)

    ks = jax.random.split(key, 9)
    k_lstm = 1.0 / jnp.sqrt(jnp.float32(H))
    k_fc = 1.0 / jnp.sqrt(jnp.float32(H))

    def u(k, shape, scale):
        return jax.random.uniform(k, shape, jnp.float32, -scale, scale)

    # nn.Embedding: N(0, 1)
    embedding = jax.random.normal(ks[0], (word_num, embed_dim), jnp.float32)

    # nn.LSTM params (pre-transposed, gate order i,f,g,o), combined bias b_ih + b_hh.
    w_ih_t = u(ks[1], (embed_dim, 4 * H), k_lstm)
    w_hh_t = u(ks[2], (H, 4 * H), k_lstm)
    b_lstm = u(ks[3], (1, 4 * H), k_lstm) + u(ks[4], (1, 4 * H), k_lstm)

    # nn.Linear(hidden, hidden) and nn.Linear(hidden, 1), pre-transposed.
    w_fc1_t = u(ks[5], (H, H), k_fc)
    b_fc1 = u(ks[6], (1, H), k_fc)
    w_fc2_t = u(ks[7], (H, 1), k_fc)
    b_fc2 = u(ks[8], (1, 1), k_fc)

    def pack_gate_cols(w):   # [rows, 4H] -> [rows, Gp], gate g at cols [g*Hg, g*Hg+H)
        rows = w.shape[0]
        out = jnp.zeros((rows, Gp), jnp.float32)
        for g in range(4):
            out = out.at[:, g * Hg:g * Hg + H].set(w[:, g * H:(g + 1) * H])
        return out

    w_ih_p = pack_gate_cols(w_ih_t)                                           # [E, Gp]
    w_hh_p = jnp.zeros((Hg, Gp), jnp.float32).at[:H].set(pack_gate_cols(w_hh_t))
    b_p = pack_gate_cols(b_lstm)                                              # [1, Gp]

    w_fc1_p = jnp.zeros((Hg, F1), jnp.float32).at[:H, :H].set(w_fc1_t)
    b_fc1_p = jnp.zeros((1, F1), jnp.float32).at[:, :H].set(b_fc1)
    w_fc2_p = jnp.zeros((F1, LANE), jnp.float32).at[:H, :1].set(w_fc2_t)
    b_fc2_p = jnp.zeros((1, LANE), jnp.float32).at[:, :1].set(b_fc2)

    return {
        "embedding": embedding,
        "w_ih_p": w_ih_p.astype(jnp.bfloat16),
        "w_hh_p": w_hh_p.astype(jnp.bfloat16),
        "b_p": b_p,
        "w_fc1_p": w_fc1_p.astype(jnp.bfloat16),
        "b_fc1_p": b_fc1_p,
        "w_fc2_p": w_fc2_p.astype(jnp.bfloat16),
        "b_fc2_p": b_fc2_p,
    }


if __name__ == "__main__":
    B, T, E, H, V = 2, 8, 32, 32, 100

    key = jax.random.PRNGKey(0)
    k_tok, k_par = jax.random.split(key)
    x_tokens = jax.random.randint(k_tok, (B, T), 0, V, dtype=jnp.int32)
    params = init_params(k_par, word_num=V, embed_dim=E, hidden=H)

    pred = jax.jit(rnn_forward)(x_tokens, params)
    pred = jax.block_until_ready(pred)
    assert pred.shape == (B,)
    assert bool(jnp.all(jnp.isfinite(pred)))
    assert bool(jnp.all((pred >= 0.0) & (pred <= 1.0)))
    print("KERNEL_OK")
</pallas_src>

<mosaic_0001>
module attributes {stable_mosaic.version = 11 : i64} {
  func.func @rnn_forward_kernel(%arg0: i32, %arg1: memref<8x8x32xbf16, #tpu.memory_space<vmem>>, %arg2: memref<32x128xbf16, #tpu.memory_space<vmem>>, %arg3: memref<32x128xbf16, #tpu.memory_space<vmem>>, %arg4: memref<1x128xf32, #tpu.memory_space<vmem>>, %arg5: memref<32x128xbf16, #tpu.memory_space<vmem>>, %arg6: memref<1x128xf32, #tpu.memory_space<vmem>>, %arg7: memref<128x128xbf16, #tpu.memory_space<vmem>>, %arg8: memref<1x128xf32, #tpu.memory_space<vmem>>, %arg9: memref<8x128xf32, #tpu.memory_space<vmem>>, %arg10: memref<64x128xbf16, #tpu.memory_space<vmem>>) attributes {dimension_semantics = [#tpu.dimension_semantics<parallel>], iteration_bounds = array<i64: 1>, scalar_prefetch = 0 : i64, scratch_operands = 1 : i64, tpu.core_type = #tpu.core_type<tc>, window_params = [{transform_indices = @transform_0, window_bounds = array<i64: 8, 8, 32>}, {pipeline_mode = #tpu.pipeline_mode<synchronous>, transform_indices = @transform_1, window_bounds = array<i64: 32, 128>}, {pipeline_mode = #tpu.pipeline_mode<synchronous>, transform_indices = @transform_2, window_bounds = array<i64: 32, 128>}, {pipeline_mode = #tpu.pipeline_mode<synchronous>, transform_indices = @transform_3, window_bounds = array<i64: 1, 128>}, {pipeline_mode = #tpu.pipeline_mode<synchronous>, transform_indices = @transform_4, window_bounds = array<i64: 32, 128>}, {pipeline_mode = #tpu.pipeline_mode<synchronous>, transform_indices = @transform_5, window_bounds = array<i64: 1, 128>}, {pipeline_mode = #tpu.pipeline_mode<synchronous>, transform_indices = @transform_6, window_bounds = array<i64: 128, 128>}, {pipeline_mode = #tpu.pipeline_mode<synchronous>, transform_indices = @transform_7, window_bounds = array<i64: 1, 128>}, {transform_indices = @transform_8, window_bounds = array<i64: 8, 128>}]} {
    %c0 = arith.constant 0 : index
    %c0_0 = arith.constant 0 : index
    %c0_1 = arith.constant 0 : index
    %0 = vector.load %arg1[%c0, %c0_0, %c0_1] : memref<8x8x32xbf16, #tpu.memory_space<vmem>>, vector<8x8x32xbf16>
    %1 = arith.extf %0 : vector<8x8x32xbf16> to vector<8x8x32xf32>
    %2 = arith.mulf %1, %1 : vector<8x8x32xf32>
    %cst = arith.constant dense<0.000000e+00> : vector<8x32xf32>
    %3 = vector.multi_reduction <add>, %2, %cst [0] : vector<8x8x32xf32> to vector<8x32xf32>
    %4 = vector.shape_cast %3 : vector<8x32xf32> to vector<1x8x32xf32>
    %cst_2 = arith.constant 1.000000e-24 : f32
    %5 = vector.broadcast %cst_2 : f32 to vector<1x8x32xf32>
    %6 = arith.maximumf %4, %5 : vector<1x8x32xf32>
    %7 = math.rsqrt %6 : vector<1x8x32xf32>
    %c0_3 = arith.constant 0 : index
    %c0_4 = arith.constant 0 : index
    %8 = vector.load %arg2[%c0_3, %c0_4] : memref<32x128xbf16, #tpu.memory_space<vmem>>, vector<32x128xbf16>
    %c0_5 = arith.constant 0 : index
    %c0_6 = arith.constant 0 : index
    %9 = vector.load %arg4[%c0_5, %c0_6] : memref<1x128xf32, #tpu.memory_space<vmem>>, vector<1x128xf32>
    %c0_7 = arith.constant 0 : index
    %c0_8 = arith.constant 0 : index
    %c0_9 = arith.constant 0 : index
    %10 = vector.load %arg1[%c0_7, %c0_8, %c0_9] : memref<8x8x32xbf16, #tpu.memory_space<vmem>>, vector<8x8x32xbf16>
    %11 = arith.extf %10 : vector<8x8x32xbf16> to vector<8x8x32xf32>
    %12 = vector.broadcast %7 : vector<1x8x32xf32> to vector<8x8x32xf32>
    %13 = arith.mulf %11, %12 : vector<8x8x32xf32>
    %14 = arith.truncf %13 : vector<8x8x32xf32> to vector<8x8x32xbf16>
    %15 = vector.shape_cast %14 : vector<8x8x32xbf16> to vector<64x32xbf16>
    %cst_10 = arith.constant dense<0.000000e+00> : vector<64x128xf32>
    %16 = tpu.matmul %15, %8, %cst_10 {dimension_numbers = #tpu.dot_dimension_numbers<[1], [0], [0], [1], [0, 0, 1, 1], [], []>} : vector<64x32xbf16>, vector<32x128xbf16>, vector<64x128xf32> -> vector<64x128xf32>
    %17 = vector.broadcast %9 : vector<1x128xf32> to vector<64x128xf32>
    %18 = arith.addf %16, %17 : vector<64x128xf32>
    %19 = arith.truncf %18 : vector<64x128xf32> to vector<64x128xbf16>
    %c0_11 = arith.constant 0 : index
    %c0_12 = arith.constant 0 : index
    %20 = vector.load %arg10[%c0_11, %c0_12] : memref<64x128xbf16, #tpu.memory_space<vmem>>, vector<64x128xbf16>
    tpu.vector_store %arg10[%c0_11, %c0_12], %19 {strides = array<i32>} : memref<64x128xbf16, #tpu.memory_space<vmem>>, vector<64x128xbf16>,
    %c0_13 = arith.constant 0 : index
    %c0_14 = arith.constant 0 : index
    %21 = vector.load %arg3[%c0_13, %c0_14] : memref<32x128xbf16, #tpu.memory_space<vmem>>, vector<32x128xbf16>
    %cst_15 = arith.constant 0.000000e+00 : f32
    %22 = vector.broadcast %cst_15 : f32 to vector<8x32xf32>
    %cst_16 = arith.constant 0.000000e+00 : f32
    %23 = vector.broadcast %cst_16 : f32 to vector<8x32xf32>
    %c0_i32 = arith.constant 0 : i32
    %c8_i32 = arith.constant 8 : i32
    %24 = arith.muli %c0_i32, %c8_i32 : i32
    %c0_i32_17 = arith.constant 0 : i32
    %25 = arith.addi %24, %c0_i32_17 : i32
    %26 = tpu.assume_multiple %25, 8 : i32
    %27 = arith.index_cast %26 : i32 to index
    %c0_18 = arith.constant 0 : index
    %28 = vector.load %arg10[%27, %c0_18] : memref<64x128xbf16, #tpu.memory_space<vmem>>, vector<8x128xbf16>
    %29 = arith.extf %28 : vector<8x128xbf16> to vector<8x128xf32>
    %30 = arith.truncf %22 : vector<8x32xf32> to vector<8x32xbf16>
    %cst_19 = arith.constant dense<0.000000e+00> : vector<8x128xf32>
    %31 = tpu.matmul %30, %21, %cst_19 {dimension_numbers = #tpu.dot_dimension_numbers<[1], [0], [0], [1], [0, 0, 1, 1], [], []>} : vector<8x32xbf16>, vector<32x128xbf16>, vector<8x128xf32> -> vector<8x128xf32>
    %32 = arith.addf %29, %31 : vector<8x128xf32>
    %33 = arith.negf %32 : vector<8x128xf32>
    %34 = math.exp %33 : vector<8x128xf32>
    %cst_20 = arith.constant 1.000000e+00 : f32
    %35 = vector.broadcast %cst_20 : f32 to vector<8x128xf32>
    %36 = arith.addf %35, %34 : vector<8x128xf32>
    %37 = arith.divf %35, %36 : vector<8x128xf32>
    %38 = math.tanh %32 : vector<8x128xf32>
    %39 = vector.extract_strided_slice %37 {offsets = [0, 0], sizes = [8, 32], strides = [1, 1]} : vector<8x128xf32> to vector<8x32xf32>
    %c96_i32 = arith.constant 96 : i32
    %40 = tpu.dynamic_rotate %37 by %c96_i32 dim 1 : vector<8x128xf32>, i32 -> vector<8x128xf32>
    %41 = vector.extract_strided_slice %40 {offsets = [0, 0], sizes = [8, 32], strides = [1, 1]} : vector<8x128xf32> to vector<8x32xf32>
    %c64_i32 = arith.constant 64 : i32
    %42 = tpu.dynamic_rotate %38 by %c64_i32 dim 1 : vector<8x128xf32>, i32 -> vector<8x128xf32>
    %43 = vector.extract_strided_slice %42 {offsets = [0, 0], sizes = [8, 32], strides = [1, 1]} : vector<8x128xf32> to vector<8x32xf32>
    %c32_i32 = arith.constant 32 : i32
    %44 = tpu.dynamic_rotate %37 by %c32_i32 dim 1 : vector<8x128xf32>, i32 -> vector<8x128xf32>
    %45 = vector.extract_strided_slice %44 {offsets = [0, 0], sizes = [8, 32], strides = [1, 1]} : vector<8x128xf32> to vector<8x32xf32>
    %46 = arith.mulf %41, %23 : vector<8x32xf32>
    %47 = arith.mulf %39, %43 : vector<8x32xf32>
    %48 = arith.addf %46, %47 : vector<8x32xf32>
    %49 = math.tanh %48 : vector<8x32xf32>
    %50 = arith.mulf %45, %49 : vector<8x32xf32>
    %c1_i32 = arith.constant 1 : i32
    %c8_i32_21 = arith.constant 8 : i32
    %51 = arith.muli %c1_i32, %c8_i32_21 : i32
    %c0_i32_22 = arith.constant 0 : i32
    %52 = arith.addi %51, %c0_i32_22 : i32
    %53 = tpu.assume_multiple %52, 8 : i32
    %54 = arith.index_cast %53 : i32 to index
    %c0_23 = arith.constant 0 : index
    %55 = vector.load %arg10[%54, %c0_23] : memref<64x128xbf16, #tpu.memory_space<vmem>>, vector<8x128xbf16>
    %56 = arith.extf %55 : vector<8x128xbf16> to vector<8x128xf32>
    %57 = arith.truncf %50 : vector<8x32xf32> to vector<8x32xbf16>
    %cst_24 = arith.constant dense<0.000000e+00> : vector<8x128xf32>
    %58 = tpu.matmul %57, %21, %cst_24 {dimension_numbers = #tpu.dot_dimension_numbers<[1], [0], [0], [1], [0, 0, 1, 1], [], []>} : vector<8x32xbf16>, vector<32x128xbf16>, vector<8x128xf32> -> vector<8x128xf32>
    %59 = arith.addf %56, %58 : vector<8x128xf32>
    %60 = arith.negf %59 : vector<8x128xf32>
    %61 = math.exp %60 : vector<8x128xf32>
    %cst_25 = arith.constant 1.000000e+00 : f32
    %62 = vector.broadcast %cst_25 : f32 to vector<8x128xf32>
    %63 = arith.addf %62, %61 : vector<8x128xf32>
    %64 = arith.divf %62, %63 : vector<8x128xf32>
    %65 = math.tanh %59 : vector<8x128xf32>
    %66 = vector.extract_strided_slice %64 {offsets = [0, 0], sizes = [8, 32], strides = [1, 1]} : vector<8x128xf32> to vector<8x32xf32>
    %c96_i32_26 = arith.constant 96 : i32
    %67 = tpu.dynamic_rotate %64 by %c96_i32_26 dim 1 : vector<8x128xf32>, i32 -> vector<8x128xf32>
    %68 = vector.extract_strided_slice %67 {offsets = [0, 0], sizes = [8, 32], strides = [1, 1]} : vector<8x128xf32> to vector<8x32xf32>
    %c64_i32_27 = arith.constant 64 : i32
    %69 = tpu.dynamic_rotate %65 by %c64_i32_27 dim 1 : vector<8x128xf32>, i32 -> vector<8x128xf32>
    %70 = vector.extract_strided_slice %69 {offsets = [0, 0], sizes = [8, 32], strides = [1, 1]} : vector<8x128xf32> to vector<8x32xf32>
    %c32_i32_28 = arith.constant 32 : i32
    %71 = tpu.dynamic_rotate %64 by %c32_i32_28 dim 1 : vector<8x128xf32>, i32 -> vector<8x128xf32>
    %72 = vector.extract_strided_slice %71 {offsets = [0, 0], sizes = [8, 32], strides = [1, 1]} : vector<8x128xf32> to vector<8x32xf32>
    %73 = arith.mulf %68, %48 : vector<8x32xf32>
    %74 = arith.mulf %66, %70 : vector<8x32xf32>
    %75 = arith.addf %73, %74 : vector<8x32xf32>
    %76 = math.tanh %75 : vector<8x32xf32>
    %77 = arith.mulf %72, %76 : vector<8x32xf32>
    %c2_i32 = arith.constant 2 : i32
    %c8_i32_29 = arith.constant 8 : i32
    %78 = arith.muli %c2_i32, %c8_i32_29 : i32
    %c0_i32_30 = arith.constant 0 : i32
    %79 = arith.addi %78, %c0_i32_30 : i32
    %80 = tpu.assume_multiple %79, 8 : i32
    %81 = arith.index_cast %80 : i32 to index
    %c0_31 = arith.constant 0 : index
    %82 = vector.load %arg10[%81, %c0_31] : memref<64x128xbf16, #tpu.memory_space<vmem>>, vector<8x128xbf16>
    %83 = arith.extf %82 : vector<8x128xbf16> to vector<8x128xf32>
    %84 = arith.truncf %77 : vector<8x32xf32> to vector<8x32xbf16>
    %cst_32 = arith.constant dense<0.000000e+00> : vector<8x128xf32>
    %85 = tpu.matmul %84, %21, %cst_32 {dimension_numbers = #tpu.dot_dimension_numbers<[1], [0], [0], [1], [0, 0, 1, 1], [], []>} : vector<8x32xbf16>, vector<32x128xbf16>, vector<8x128xf32> -> vector<8x128xf32>
    %86 = arith.addf %83, %85 : vector<8x128xf32>
    %87 = arith.negf %86 : vector<8x128xf32>
    %88 = math.exp %87 : vector<8x128xf32>
    %cst_33 = arith.constant 1.000000e+00 : f32
    %89 = vector.broadcast %cst_33 : f32 to vector<8x128xf32>
    %90 = arith.addf %89, %88 : vector<8x128xf32>
    %91 = arith.divf %89, %90 : vector<8x128xf32>
    %92 = math.tanh %86 : vector<8x128xf32>
    %93 = vector.extract_strided_slice %91 {offsets = [0, 0], sizes = [8, 32], strides = [1, 1]} : vector<8x128xf32> to vector<8x32xf32>
    %c96_i32_34 = arith.constant 96 : i32
    %94 = tpu.dynamic_rotate %91 by %c96_i32_34 dim 1 : vector<8x128xf32>, i32 -> vector<8x128xf32>
    %95 = vector.extract_strided_slice %94 {offsets = [0, 0], sizes = [8, 32], strides = [1, 1]} : vector<8x128xf32> to vector<8x32xf32>
    %c64_i32_35 = arith.constant 64 : i32
    %96 = tpu.dynamic_rotate %92 by %c64_i32_35 dim 1 : vector<8x128xf32>, i32 -> vector<8x128xf32>
    %97 = vector.extract_strided_slice %96 {offsets = [0, 0], sizes = [8, 32], strides = [1, 1]} : vector<8x128xf32> to vector<8x32xf32>
    %c32_i32_36 = arith.constant 32 : i32
    %98 = tpu.dynamic_rotate %91 by %c32_i32_36 dim 1 : vector<8x128xf32>, i32 -> vector<8x128xf32>
    %99 = vector.extract_strided_slice %98 {offsets = [0, 0], sizes = [8, 32], strides = [1, 1]} : vector<8x128xf32> to vector<8x32xf32>
    %100 = arith.mulf %95, %75 : vector<8x32xf32>
    %101 = arith.mulf %93, %97 : vector<8x32xf32>
    %102 = arith.addf %100, %101 : vector<8x32xf32>
    %103 = math.tanh %102 : vector<8x32xf32>
    %104 = arith.mulf %99, %103 : vector<8x32xf32>
    %c3_i32 = arith.constant 3 : i32
    %c8_i32_37 = arith.constant 8 : i32
    %105 = arith.muli %c3_i32, %c8_i32_37 : i32
    %c0_i32_38 = arith.constant 0 : i32
    %106 = arith.addi %105, %c0_i32_38 : i32
    %107 = tpu.assume_multiple %106, 8 : i32
    %108 = arith.index_cast %107 : i32 to index
    %c0_39 = arith.constant 0 : index
    %109 = vector.load %arg10[%108, %c0_39] : memref<64x128xbf16, #tpu.memory_space<vmem>>, vector<8x128xbf16>
    %110 = arith.extf %109 : vector<8x128xbf16> to vector<8x128xf32>
    %111 = arith.truncf %104 : vector<8x32xf32> to vector<8x32xbf16>
    %cst_40 = arith.constant dense<0.000000e+00> : vector<8x128xf32>
    %112 = tpu.matmul %111, %21, %cst_40 {dimension_numbers = #tpu.dot_dimension_numbers<[1], [0], [0], [1], [0, 0, 1, 1], [], []>} : vector<8x32xbf16>, vector<32x128xbf16>, vector<8x128xf32> -> vector<8x128xf32>
    %113 = arith.addf %110, %112 : vector<8x128xf32>
    %114 = arith.negf %113 : vector<8x128xf32>
    %115 = math.exp %114 : vector<8x128xf32>
    %cst_41 = arith.constant 1.000000e+00 : f32
    %116 = vector.broadcast %cst_41 : f32 to vector<8x128xf32>
    %117 = arith.addf %116, %115 : vector<8x128xf32>
    %118 = arith.divf %116, %117 : vector<8x128xf32>
    %119 = math.tanh %113 : vector<8x128xf32>
    %120 = vector.extract_strided_slice %118 {offsets = [0, 0], sizes = [8, 32], strides = [1, 1]} : vector<8x128xf32> to vector<8x32xf32>
    %c96_i32_42 = arith.constant 96 : i32
    %121 = tpu.dynamic_rotate %118 by %c96_i32_42 dim 1 : vector<8x128xf32>, i32 -> vector<8x128xf32>
    %122 = vector.extract_strided_slice %121 {offsets = [0, 0], sizes = [8, 32], strides = [1, 1]} : vector<8x128xf32> to vector<8x32xf32>
    %c64_i32_43 = arith.constant 64 : i32
    %123 = tpu.dynamic_rotate %119 by %c64_i32_43 dim 1 : vector<8x128xf32>, i32 -> vector<8x128xf32>
    %124 = vector.extract_strided_slice %123 {offsets = [0, 0], sizes = [8, 32], strides = [1, 1]} : vector<8x128xf32> to vector<8x32xf32>
    %c32_i32_44 = arith.constant 32 : i32
    %125 = tpu.dynamic_rotate %118 by %c32_i32_44 dim 1 : vector<8x128xf32>, i32 -> vector<8x128xf32>
    %126 = vector.extract_strided_slice %125 {offsets = [0, 0], sizes = [8, 32], strides = [1, 1]} : vector<8x128xf32> to vector<8x32xf32>
    %127 = arith.mulf %122, %102 : vector<8x32xf32>
    %128 = arith.mulf %120, %124 : vector<8x32xf32>
    %129 = arith.addf %127, %128 : vector<8x32xf32>
    %130 = math.tanh %129 : vector<8x32xf32>
    %131 = arith.mulf %126, %130 : vector<8x32xf32>
    %c4_i32 = arith.constant 4 : i32
    %c8_i32_45 = arith.constant 8 : i32
    %132 = arith.muli %c4_i32, %c8_i32_45 : i32
    %c0_i32_46 = arith.constant 0 : i32
    %133 = arith.addi %132, %c0_i32_46 : i32
    %134 = tpu.assume_multiple %133, 8 : i32
    %135 = arith.index_cast %134 : i32 to index
    %c0_47 = arith.constant 0 : index
    %136 = vector.load %arg10[%135, %c0_47] : memref<64x128xbf16, #tpu.memory_space<vmem>>, vector<8x128xbf16>
    %137 = arith.extf %136 : vector<8x128xbf16> to vector<8x128xf32>
    %138 = arith.truncf %131 : vector<8x32xf32> to vector<8x32xbf16>
    %cst_48 = arith.constant dense<0.000000e+00> : vector<8x128xf32>
    %139 = tpu.matmul %138, %21, %cst_48 {dimension_numbers = #tpu.dot_dimension_numbers<[1], [0], [0], [1], [0, 0, 1, 1], [], []>} : vector<8x32xbf16>, vector<32x128xbf16>, vector<8x128xf32> -> vector<8x128xf32>
    %140 = arith.addf %137, %139 : vector<8x128xf32>
    %141 = arith.negf %140 : vector<8x128xf32>
    %142 = math.exp %141 : vector<8x128xf32>
    %cst_49 = arith.constant 1.000000e+00 : f32
    %143 = vector.broadcast %cst_49 : f32 to vector<8x128xf32>
    %144 = arith.addf %143, %142 : vector<8x128xf32>
    %145 = arith.divf %143, %144 : vector<8x128xf32>
    %146 = math.tanh %140 : vector<8x128xf32>
    %147 = vector.extract_strided_slice %145 {offsets = [0, 0], sizes = [8, 32], strides = [1, 1]} : vector<8x128xf32> to vector<8x32xf32>
    %c96_i32_50 = arith.constant 96 : i32
    %148 = tpu.dynamic_rotate %145 by %c96_i32_50 dim 1 : vector<8x128xf32>, i32 -> vector<8x128xf32>
    %149 = vector.extract_strided_slice %148 {offsets = [0, 0], sizes = [8, 32], strides = [1, 1]} : vector<8x128xf32> to vector<8x32xf32>
    %c64_i32_51 = arith.constant 64 : i32
    %150 = tpu.dynamic_rotate %146 by %c64_i32_51 dim 1 : vector<8x128xf32>, i32 -> vector<8x128xf32>
    %151 = vector.extract_strided_slice %150 {offsets = [0, 0], sizes = [8, 32], strides = [1, 1]} : vector<8x128xf32> to vector<8x32xf32>
    %c32_i32_52 = arith.constant 32 : i32
    %152 = tpu.dynamic_rotate %145 by %c32_i32_52 dim 1 : vector<8x128xf32>, i32 -> vector<8x128xf32>
    %153 = vector.extract_strided_slice %152 {offsets = [0, 0], sizes = [8, 32], strides = [1, 1]} : vector<8x128xf32> to vector<8x32xf32>
    %154 = arith.mulf %149, %129 : vector<8x32xf32>
    %155 = arith.mulf %147, %151 : vector<8x32xf32>
    %156 = arith.addf %154, %155 : vector<8x32xf32>
    %157 = math.tanh %156 : vector<8x32xf32>
    %158 = arith.mulf %153, %157 : vector<8x32xf32>
    %c5_i32 = arith.constant 5 : i32
    %c8_i32_53 = arith.constant 8 : i32
    %159 = arith.muli %c5_i32, %c8_i32_53 : i32
    %c0_i32_54 = arith.constant 0 : i32
    %160 = arith.addi %159, %c0_i32_54 : i32
    %161 = tpu.assume_multiple %160, 8 : i32
    %162 = arith.index_cast %161 : i32 to index
    %c0_55 = arith.constant 0 : index
    %163 = vector.load %arg10[%162, %c0_55] : memref<64x128xbf16, #tpu.memory_space<vmem>>, vector<8x128xbf16>
    %164 = arith.extf %163 : vector<8x128xbf16> to vector<8x128xf32>
    %165 = arith.truncf %158 : vector<8x32xf32> to vector<8x32xbf16>
    %cst_56 = arith.constant dense<0.000000e+00> : vector<8x128xf32>
    %166 = tpu.matmul %165, %21, %cst_56 {dimension_numbers = #tpu.dot_dimension_numbers<[1], [0], [0], [1], [0, 0, 1, 1], [], []>} : vector<8x32xbf16>, vector<32x128xbf16>, vector<8x128xf32> -> vector<8x128xf32>
    %167 = arith.addf %164, %166 : vector<8x128xf32>
    %168 = arith.negf %167 : vector<8x128xf32>
    %169 = math.exp %168 : vector<8x128xf32>
    %cst_57 = arith.constant 1.000000e+00 : f32
    %170 = vector.broadcast %cst_57 : f32 to vector<8x128xf32>
    %171 = arith.addf %170, %169 : vector<8x128xf32>
    %172 = arith.divf %170, %171 : vector<8x128xf32>
    %173 = math.tanh %167 : vector<8x128xf32>
    %174 = vector.extract_strided_slice %172 {offsets = [0, 0], sizes = [8, 32], strides = [1, 1]} : vector<8x128xf32> to vector<8x32xf32>
    %c96_i32_58 = arith.constant 96 : i32
    %175 = tpu.dynamic_rotate %172 by %c96_i32_58 dim 1 : vector<8x128xf32>, i32 -> vector<8x128xf32>
    %176 = vector.extract_strided_slice %175 {offsets = [0, 0], sizes = [8, 32], strides = [1, 1]} : vector<8x128xf32> to vector<8x32xf32>
    %c64_i32_59 = arith.constant 64 : i32
    %177 = tpu.dynamic_rotate %173 by %c64_i32_59 dim 1 : vector<8x128xf32>, i32 -> vector<8x128xf32>
    %178 = vector.extract_strided_slice %177 {offsets = [0, 0], sizes = [8, 32], strides = [1, 1]} : vector<8x128xf32> to vector<8x32xf32>
    %c32_i32_60 = arith.constant 32 : i32
    %179 = tpu.dynamic_rotate %172 by %c32_i32_60 dim 1 : vector<8x128xf32>, i32 -> vector<8x128xf32>
    %180 = vector.extract_strided_slice %179 {offsets = [0, 0], sizes = [8, 32], strides = [1, 1]} : vector<8x128xf32> to vector<8x32xf32>
    %181 = arith.mulf %176, %156 : vector<8x32xf32>
    %182 = arith.mulf %174, %178 : vector<8x32xf32>
    %183 = arith.addf %181, %182 : vector<8x32xf32>
    %184 = math.tanh %183 : vector<8x32xf32>
    %185 = arith.mulf %180, %184 : vector<8x32xf32>
    %c6_i32 = arith.constant 6 : i32
    %c8_i32_61 = arith.constant 8 : i32
    %186 = arith.muli %c6_i32, %c8_i32_61 : i32
    %c0_i32_62 = arith.constant 0 : i32
    %187 = arith.addi %186, %c0_i32_62 : i32
    %188 = tpu.assume_multiple %187, 8 : i32
    %189 = arith.index_cast %188 : i32 to index
    %c0_63 = arith.constant 0 : index
    %190 = vector.load %arg10[%189, %c0_63] : memref<64x128xbf16, #tpu.memory_space<vmem>>, vector<8x128xbf16>
    %191 = arith.extf %190 : vector<8x128xbf16> to vector<8x128xf32>
    %192 = arith.truncf %185 : vector<8x32xf32> to vector<8x32xbf16>
    %cst_64 = arith.constant dense<0.000000e+00> : vector<8x128xf32>
    %193 = tpu.matmul %192, %21, %cst_64 {dimension_numbers = #tpu.dot_dimension_numbers<[1], [0], [0], [1], [0, 0, 1, 1], [], []>} : vector<8x32xbf16>, vector<32x128xbf16>, vector<8x128xf32> -> vector<8x128xf32>
    %194 = arith.addf %191, %193 : vector<8x128xf32>
    %195 = arith.negf %194 : vector<8x128xf32>
    %196 = math.exp %195 : vector<8x128xf32>
    %cst_65 = arith.constant 1.000000e+00 : f32
    %197 = vector.broadcast %cst_65 : f32 to vector<8x128xf32>
    %198 = arith.addf %197, %196 : vector<8x128xf32>
    %199 = arith.divf %197, %198 : vector<8x128xf32>
    %200 = math.tanh %194 : vector<8x128xf32>
    %201 = vector.extract_strided_slice %199 {offsets = [0, 0], sizes = [8, 32], strides = [1, 1]} : vector<8x128xf32> to vector<8x32xf32>
    %c96_i32_66 = arith.constant 96 : i32
    %202 = tpu.dynamic_rotate %199 by %c96_i32_66 dim 1 : vector<8x128xf32>, i32 -> vector<8x128xf32>
    %203 = vector.extract_strided_slice %202 {offsets = [0, 0], sizes = [8, 32], strides = [1, 1]} : vector<8x128xf32> to vector<8x32xf32>
    %c64_i32_67 = arith.constant 64 : i32
    %204 = tpu.dynamic_rotate %200 by %c64_i32_67 dim 1 : vector<8x128xf32>, i32 -> vector<8x128xf32>
    %205 = vector.extract_strided_slice %204 {offsets = [0, 0], sizes = [8, 32], strides = [1, 1]} : vector<8x128xf32> to vector<8x32xf32>
    %c32_i32_68 = arith.constant 32 : i32
    %206 = tpu.dynamic_rotate %199 by %c32_i32_68 dim 1 : vector<8x128xf32>, i32 -> vector<8x128xf32>
    %207 = vector.extract_strided_slice %206 {offsets = [0, 0], sizes = [8, 32], strides = [1, 1]} : vector<8x128xf32> to vector<8x32xf32>
    %208 = arith.mulf %203, %183 : vector<8x32xf32>
    %209 = arith.mulf %201, %205 : vector<8x32xf32>
    %210 = arith.addf %208, %209 : vector<8x32xf32>
    %211 = math.tanh %210 : vector<8x32xf32>
    %212 = arith.mulf %207, %211 : vector<8x32xf32>
    %c7_i32 = arith.constant 7 : i32
    %c8_i32_69 = arith.constant 8 : i32
    %213 = arith.muli %c7_i32, %c8_i32_69 : i32
    %c0_i32_70 = arith.constant 0 : i32
    %214 = arith.addi %213, %c0_i32_70 : i32
    %215 = tpu.assume_multiple %214, 8 : i32
    %216 = arith.index_cast %215 : i32 to index
    %c0_71 = arith.constant 0 : index
    %217 = vector.load %arg10[%216, %c0_71] : memref<64x128xbf16, #tpu.memory_space<vmem>>, vector<8x128xbf16>
    %218 = arith.extf %217 : vector<8x128xbf16> to vector<8x128xf32>
    %219 = arith.truncf %212 : vector<8x32xf32> to vector<8x32xbf16>
    %cst_72 = arith.constant dense<0.000000e+00> : vector<8x128xf32>
    %220 = tpu.matmul %219, %21, %cst_72 {dimension_numbers = #tpu.dot_dimension_numbers<[1], [0], [0], [1], [0, 0, 1, 1], [], []>} : vector<8x32xbf16>, vector<32x128xbf16>, vector<8x128xf32> -> vector<8x128xf32>
    %221 = arith.addf %218, %220 : vector<8x128xf32>
    %222 = arith.negf %221 : vector<8x128xf32>
    %223 = math.exp %222 : vector<8x128xf32>
    %cst_73 = arith.constant 1.000000e+00 : f32
    %224 = vector.broadcast %cst_73 : f32 to vector<8x128xf32>
    %225 = arith.addf %224, %223 : vector<8x128xf32>
    %226 = arith.divf %224, %225 : vector<8x128xf32>
    %227 = math.tanh %221 : vector<8x128xf32>
    %228 = vector.extract_strided_slice %226 {offsets = [0, 0], sizes = [8, 32], strides = [1, 1]} : vector<8x128xf32> to vector<8x32xf32>
    %c96_i32_74 = arith.constant 96 : i32
    %229 = tpu.dynamic_rotate %226 by %c96_i32_74 dim 1 : vector<8x128xf32>, i32 -> vector<8x128xf32>
    %230 = vector.extract_strided_slice %229 {offsets = [0, 0], sizes = [8, 32], strides = [1, 1]} : vector<8x128xf32> to vector<8x32xf32>
    %c64_i32_75 = arith.constant 64 : i32
    %231 = tpu.dynamic_rotate %227 by %c64_i32_75 dim 1 : vector<8x128xf32>, i32 -> vector<8x128xf32>
    %232 = vector.extract_strided_slice %231 {offsets = [0, 0], sizes = [8, 32], strides = [1, 1]} : vector<8x128xf32> to vector<8x32xf32>
    %c32_i32_76 = arith.constant 32 : i32
    %233 = tpu.dynamic_rotate %226 by %c32_i32_76 dim 1 : vector<8x128xf32>, i32 -> vector<8x128xf32>
    %234 = vector.extract_strided_slice %233 {offsets = [0, 0], sizes = [8, 32], strides = [1, 1]} : vector<8x128xf32> to vector<8x32xf32>
    %235 = arith.mulf %230, %210 : vector<8x32xf32>
    %236 = arith.mulf %228, %232 : vector<8x32xf32>
    %237 = arith.addf %235, %236 : vector<8x32xf32>
    %238 = math.tanh %237 : vector<8x32xf32>
    %239 = arith.mulf %234, %238 : vector<8x32xf32>
    %c8_i32_77 = arith.constant 8 : i32
    %240 = arith.truncf %239 : vector<8x32xf32> to vector<8x32xbf16>
    %c0_78 = arith.constant 0 : index
    %c0_79 = arith.constant 0 : index
    %241 = vector.load %arg5[%c0_78, %c0_79] : memref<32x128xbf16, #tpu.memory_space<vmem>>, vector<32x128xbf16>
    %cst_80 = arith.constant dense<0.000000e+00> : vector<8x128xf32>
    %242 = tpu.matmul %240, %241, %cst_80 {dimension_numbers = #tpu.dot_dimension_numbers<[1], [0], [0], [1], [0, 0, 1, 1], [], []>} : vector<8x32xbf16>, vector<32x128xbf16>, vector<8x128xf32> -> vector<8x128xf32>
    %c0_81 = arith.constant 0 : index
    %c0_82 = arith.constant 0 : index
    %243 = vector.load %arg6[%c0_81, %c0_82] : memref<1x128xf32, #tpu.memory_space<vmem>>, vector<1x128xf32>
    %244 = vector.broadcast %243 : vector<1x128xf32> to vector<8x128xf32>
    %245 = arith.addf %242, %244 : vector<8x128xf32>
    %cst_83 = arith.constant 0.000000e+00 : f32
    %246 = vector.broadcast %cst_83 : f32 to vector<8x128xf32>
    %247 = arith.maximumf %245, %246 : vector<8x128xf32>
    %248 = arith.truncf %247 : vector<8x128xf32> to vector<8x128xbf16>
    %c0_84 = arith.constant 0 : index
    %c0_85 = arith.constant 0 : index
    %249 = vector.load %arg7[%c0_84, %c0_85] : memref<128x128xbf16, #tpu.memory_space<vmem>>, vector<128x128xbf16>
    %cst_86 = arith.constant dense<0.000000e+00> : vector<8x128xf32>
    %250 = tpu.matmul %248, %249, %cst_86 {dimension_numbers = #tpu.dot_dimension_numbers<[1], [0], [0], [1], [0, 0, 1, 1], [], []>} : vector<8x128xbf16>, vector<128x128xbf16>, vector<8x128xf32> -> vector<8x128xf32>
    %c0_87 = arith.constant 0 : index
    %c0_88 = arith.constant 0 : index
    %251 = vector.load %arg8[%c0_87, %c0_88] : memref<1x128xf32, #tpu.memory_space<vmem>>, vector<1x128xf32>
    %252 = vector.broadcast %251 : vector<1x128xf32> to vector<8x128xf32>
    %253 = arith.addf %250, %252 : vector<8x128xf32>
    %254 = arith.negf %253 : vector<8x128xf32>
    %255 = math.exp %254 : vector<8x128xf32>
    %cst_89 = arith.constant 1.000000e+00 : f32
    %256 = vector.broadcast %cst_89 : f32 to vector<8x128xf32>
    %257 = arith.addf %256, %255 : vector<8x128xf32>
    %258 = arith.divf %256, %257 : vector<8x128xf32>
    %c0_90 = arith.constant 0 : index
    %c0_91 = arith.constant 0 : index
    %259 = vector.load %arg9[%c0_90, %c0_91] : memref<8x128xf32, #tpu.memory_space<vmem>>, vector<8x128xf32>
    tpu.vector_store %arg9[%c0_90, %c0_91], %258 {strides = array<i32>} : memref<8x128xf32, #tpu.memory_space<vmem>>, vector<8x128xf32>,
    return
  }
  func.func @transform_0(%arg0: i32) -> (i32, i32, i32) {
    %c0_i32 = arith.constant 0 : i32
    %c0_i32_0 = arith.constant 0 : i32
    %c0_i32_1 = arith.constant 0 : i32
    return %c0_i32, %arg0, %c0_i32_0 : i32, i32, i32
  }
  func.func @transform_1(%arg0: i32) -> (i32, i32) {
    %c0_i32 = arith.constant 0 : i32
    %c0_i32_0 = arith.constant 0 : i32
    %c0_i32_1 = arith.constant 0 : i32
    return %c0_i32, %c0_i32_0 : i32, i32
  }
  func.func @transform_2(%arg0: i32) -> (i32, i32) {
    %c0_i32 = arith.constant 0 : i32
    %c0_i32_0 = arith.constant 0 : i32
    %c0_i32_1 = arith.constant 0 : i32
    return %c0_i32, %c0_i32_0 : i32, i32
  }
  func.func @transform_3(%arg0: i32) -> (i32, i32) {
    %c0_i32 = arith.constant 0 : i32
    %c0_i32_0 = arith.constant 0 : i32
    %c0_i32_1 = arith.constant 0 : i32
    return %c0_i32, %c0_i32_0 : i32, i32
  }
  func.func @transform_4(%arg0: i32) -> (i32, i32) {
    %c0_i32 = arith.constant 0 : i32
    %c0_i32_0 = arith.constant 0 : i32
    %c0_i32_1 = arith.constant 0 : i32
    return %c0_i32, %c0_i32_0 : i32, i32
  }
  func.func @transform_5(%arg0: i32) -> (i32, i32) {
    %c0_i32 = arith.constant 0 : i32
    %c0_i32_0 = arith.constant 0 : i32
    %c0_i32_1 = arith.constant 0 : i32
    return %c0_i32, %c0_i32_0 : i32, i32
  }
  func.func @transform_6(%arg0: i32) -> (i32, i32) {
    %c0_i32 = arith.constant 0 : i32
    %c0_i32_0 = arith.constant 0 : i32
    %c0_i32_1 = arith.constant 0 : i32
    return %c0_i32, %c0_i32_0 : i32, i32
  }
  func.func @transform_7(%arg0: i32) -> (i32, i32) {
    %c0_i32 = arith.constant 0 : i32
    %c0_i32_0 = arith.constant 0 : i32
    %c0_i32_1 = arith.constant 0 : i32
    return %c0_i32, %c0_i32_0 : i32, i32
  }
  func.func @transform_8(%arg0: i32) -> (i32, i32) {
    %c0_i32 = arith.constant 0 : i32
    %c0_i32_0 = arith.constant 0 : i32
    return %arg0, %c0_i32 : i32, i32
  }
}

</mosaic_0001>

<bundles_post_ra>
// kernel: rnn_forward.1
= control target key start
LH: loop header
LB: loop body
LE: loop exit
PB: predicated region body
PF: predicated region fallthrough
CT: control target
= control target key end

     0   :  { %vm54_vm0 = vcmask 261120   ;;  %v980_v61 = vmov 0   ;;  %s982_s20 = smov 96   ;;  %s983_s21 = smov 64   ;;  %s1209_s1 = inlined_call_operand.vmem [shape: bf16[32,128], index: 1, kind: input, shape index: {}]   ;;  %s1210_s0 = inlined_call_operand.vmem [shape: bf16[8,8,32], index: 0, kind: input, shape index: {}]   ;;  %s1211_s3 = inlined_call_operand.vmem [shape: f32[1,128], index: 3, kind: input, shape index: {}]   ;;  %s1212_s2 = inlined_call_operand.vmem [shape: bf16[32,128], index: 2, kind: input, shape index: {}]   ;;  %s1213_s5 = inlined_call_operand.vmem [shape: f32[1,128], index: 5, kind: input, shape index: {}]   ;;  %s1214_s4 = inlined_call_operand.vmem [shape: bf16[32,128], index: 4, kind: input, shape index: {}]   ;;  %s1215_s6 = inlined_call_operand.vmem [shape: bf16[128,128], index: 6, kind: input, shape index: {}]   ;;  %s1216_s7 = inlined_call_operand.vmem [shape: f32[1,128], index: 7, kind: input, shape index: {}]   ;;  %s1217_s8 = inlined_call_operand.vmem [shape: f32[8,128], index: 8, kind: output, shape index: {}]  }
   0x1   :  { %v846_v0 = vld [vmem:[%s1209_s1 + $0x8] sm:$0xff]  ;;  %v860_v1 = vld [vmem:[%s1210_s0] sm:$0xff]   ;;  %v896_v5 = vld [vmem:[%s1210_s0 + $0x10] sm:$0xff]  }
   0x2   :  { %v1035_v2 = vunpack.c.l.bf16 %v860_v1  ;;  %v1037_v3 = vunpack.c.h.bf16 %v860_v1  ;;  %v895_v4 = vld [vmem:[%s1210_s0 + $0x8] sm:$0xff]   ;;  %155 = vmatpush.bf16.msra.mxu0 %v846_v0  ;;  %901 = vmatpush.bf16.msra.mxu1 %v846_v0  ;;  %v845_v6 = vld [vmem:[%s1209_s1] sm:$0xff]  ;;  %v1052_v9 = vunpack.c.l.bf16 %v896_v5  ;;  %v897_v10 = vld [vmem:[%s1210_s0 + $0x18] sm:$0xff]   ;;  %v1057_v11 = vunpack.c.h.bf16 %v896_v5 }
   0x3   :  { %v1048_v7 = vunpack.c.l.bf16 %v895_v4  ;;  %v1050_v8 = vunpack.c.h.bf16 %v895_v4  ;;  %v873_v16 = vunpack.c.l.bf16 %v897_v10  ;;  %v874_v22 = vunpack.c.h.bf16 %v897_v10  ;;  %v1082_v36 = vld [vmem:[%s1212_s2 + $0x8] sm:$0xff]  ;;  %v1088_v38 = vld [vmem:[%s1212_s2] sm:$0xff] }
   0x4   :  { %v46_v12 = vmul.f32 %v1035_v2, %v1035_v2  ;;  %v47_v13 = vmul.f32 %v1037_v3, %v1037_v3  ;;  %v50_v17 = vmul.f32 %v1052_v9, %v1052_v9  ;;  %v51_v23 = vmul.f32 %v1057_v11, %v1057_v11  ;;  %273 = vmatpush.bf16.msra.mxu2 %v1082_v36  ;;  %v1116_v0 = vld [vmem:[%s1211_s3] ss:$0 sm:$0xff]  ;;  %s981_s3 = smov 32  }
   0x5   :  { %v48_v14 = vmul.f32 %v1048_v7, %v1048_v7  ;;  %v49_v15 = vmul.f32 %v1050_v8, %v1050_v8  ;;  %v52_v26 = vmul.f32 %v873_v16, %v873_v16  ;;  %v53_v29 = vmul.f32 %v874_v22, %v874_v22  ;;  %325 = vmatpush.bf16.msra.mxu3 %v1082_v36 }
   0x6   :  { %v55_v18 = vsel %vm54_vm0, %v46_v12, 0.0  ;;  %v56_v19 = vsel %vm54_vm0, %v47_v13, 0.0  ;;  %156 = vmatpush.bf16.msra.mxu0 %v845_v6  ;;  %902 = vmatpush.bf16.msra.mxu1 %v845_v6  ;;  %v62_v27 = vsel %vm54_vm0, %v50_v17, 0.0  ;;  %v64_v30 = vsel %vm54_vm0, %v51_v23, 0.0 }
   0x7   :  { %v57_v20 = vadd.f32 %v56_v19, %v55_v18  ;;  %v58_v21 = vsel %vm54_vm0, %v48_v14, 0.0  ;;  %v60_v24 = vsel %vm54_vm0, %v49_v15, 0.0  ;;  %v66_v32 = vsel %vm54_vm0, %v52_v26, 0.0 }
   0x8   :  { %v68_v34 = vsel %vm54_vm0, %v53_v29, 0.0  ;;  %274 = vmatpush.bf16.msra.mxu2 %v1088_v38 }
   0x9   :  { %v59_v25 = vadd.f32 %v58_v21, %v57_v20  ;;  %326 = vmatpush.bf16.msra.mxu3 %v1088_v38 }
   0xa   :  { %221 = vmatpush.bf16.msrb.mxu1 %v1082_v36 }
   0xb   :  { %v61_v28 = vadd.f32 %v60_v24, %v59_v25 }
   0xc   :  { %429 = vmatpush.bf16.msrb.mxu2 %v1082_v36 }
   0xd   :  { %v63_v31 = vadd.f32 %v62_v27, %v61_v28  ;;  %481 = vmatpush.bf16.msrb.mxu3 %v1082_v36 }
   0xe   :  { %222 = vmatpush.bf16.msrb.mxu1 %v1088_v38 }
   0xf   :  { %v65_v33 = vadd.f32 %v64_v30, %v63_v31 }
  0x10   :  { %430 = vmatpush.bf16.msrb.mxu2 %v1088_v38 }
  0x11   :  { %v67_v35 = vadd.f32 %v66_v32, %v65_v33  ;;  %482 = vmatpush.bf16.msrb.mxu3 %v1088_v38 }
  0x13   :  { %v69_v37 = vadd.f32 %v68_v34, %v67_v35 }
  0x15   :  { %v70_v39 = vmax.f32 %v69_v37, 1e-24 }
  0x17   :  { %910 = vrsqrt.f32 %v70_v39  ;;  %vm77_vm1 = vweird.f32 %v70_v39 }
  0x1d   :  { %v911_v40 = vpop.eup %910 }
  0x1e   :  { %v72_v41 = vmul.f32 %v911_v40, %v70_v39  ;;  %vm78_vm2 = vweird.f32 %v911_v40 }
  0x1f   :  { %vm79_vm3 = vmor %vm77_vm1, %vm78_vm2 }
  0x20   :  { %v73_v42 = vmul.f32 %v911_v40, %v72_v41 }
  0x22   :  { %v74_v43 = vmul.f32 0.5, %v73_v42 }
  0x24   :  { %v75_v44 = vsub.f32 1.5, %v74_v43 }
  0x26   :  { %v76_v45 = vmul.f32 %v911_v40, %v75_v44 }
  0x28   :  { %v1099_v46 = vsel %vm79_vm3, %v911_v40, %v76_v45 }
  0x29   :  { %v86_v47 = vmul.f32 %v1035_v2, %v1099_v46  ;;  %v87_v48 = vmul.f32 %v1037_v3, %v1099_v46  ;;  %v92_v49 = vmul.f32 %v873_v16, %v1099_v46  ;;  %v93_v50 = vmul.f32 %v874_v22, %v1099_v46 }
  0x2b   :  { %v94_v51 = vpack.c.bf16 %v86_v47, %v86_v47  ;;  %v95_v52 = vpack.c.bf16 %v87_v48, %v87_v48  ;;  %v100_v53 = vpack.c.bf16 %v92_v49, %v92_v49  ;;  %v101_v54 = vpack.c.bf16 %v93_v50, %v93_v50 }
  0x2d   :  { %v113_v55 = vunpack.c.l.b16 %v94_v51  ;;  %v114_v56 = vunpack.c.l.b16 %v95_v52  ;;  %v119_v57 = vunpack.c.l.b16 %v100_v53  ;;  %v120_v58 = vunpack.c.l.b16 %v101_v54 }
  0x2f   :  { %v121_v59 = vpack.c.b16 %v114_v56, %v113_v55  ;;  %v124_v60 = vpack.c.b16 %v120_v58, %v119_v57 }
  0x31   :  { %776 = vmatmul.msk.bf16.vlgmr.msra.gmra.mxu0 %vm54_vm0, %v121_v59  ;;  %779 = vmatmul.msk.bf16.vlgmr.msra.gmra.mxu1 %vm54_vm0, %v124_v60  ;;  %v88_v60 = vmul.f32 %v1048_v7, %v1099_v46 }
  0x32   :  { %377 = vmatpush.bf16.msra.mxu1 %v1082_v36 }
  0x36   :  { %378 = vmatpush.bf16.msra.mxu1 %v1088_v38 }
  0x41   :  { %223 = vmatmul.bf16.vlgmr.msrb.gmra.mxu1 %v980_v61  ;;  %v89_v61 = vmul.f32 %v1050_v8, %v1099_v46 }
  0x42   :  { %533 = vmatpush.bf16.msrb.mxu1 %v1082_v36 }
  0x46   :  { %534 = vmatpush.bf16.msrb.mxu1 %v1088_v38 }
  0xae   :  { %v158_v62 = vpop.f32.mrf.mxu0  ;;  %v173_v63 = vpop.f32.mrf.mxu1 }
  0xaf   :  { %v159_v3 = vadd.f32 %v1116_v0, %v158_v62  ;;  %v174_v4 = vadd.f32 %v1116_v0, %v173_v63  ;;  %v96_v62 = vpack.c.bf16 %v88_v60, %v88_v60  ;;  %v97_v63 = vpack.c.bf16 %v89_v61, %v89_v61 }
  0xb6   :  { %v160_v1 = vpop.f32.mrf.mxu0  ;;  %v175_v2 = vpop.f32.mrf.mxu1 }
  0xb7   :  { %v161_v5 = vadd.f32 %v1116_v0, %v160_v1  ;;  %v176_v6 = vadd.f32 %v1116_v0, %v175_v2  ;;  %v115_v1 = vunpack.c.l.b16 %v96_v62  ;;  %v116_v2 = vunpack.c.l.b16 %v97_v63 }
  0xb9   :  { %v878_v10 = vpack.c.bf16 %v161_v5, %v159_v3  ;;  %v893_v12 = vpack.c.bf16 %v176_v6, %v174_v4  ;;  %v122_v3 = vpack.c.b16 %v116_v2, %v115_v1 }
  0xbb   :  { %879 = vst [vmem:[#allocation2] sm:$0xff] %v878_v10   ;;  %777 = vmatmul.msk.bf16.gmra.mxu0 %vm54_vm0, %v122_v3 }
  0xbc   :  { %900 = vst [vmem:[#allocation2 + $0x18] sm:$0xff] %v893_v12  }
  0xbe   :  { %v224_v13 = vpop.f32.mrf.mxu1 }
  0xc2   :  { %v198_v14 = vld [vmem:[#allocation2] sm:$0xff]  }
  0xc3   :  { %v199_v15 = vunpack.c.l.bf16 %v198_v14  ;;  %v262_v43 = vunpack.c.h.bf16 %v198_v14 }
  0xc5   :  { %v228_v16 = vadd.f32 %v224_v13, %v199_v15 }
  0xc6   :  { %v226_v17 = vpop.f32.mrf.mxu1 }
  0xc7   :  { %v788_v18 = vmul.f32 -1.442695, %v228_v16 }
  0xc9   :  { %912 = vpow2.f32 %v788_v18 }
  0xcf   :  { %v913_v19 = vpop.eup %912 }
  0xd0   :  { %v232_v20 = vadd.f32 1.0, %v913_v19 }
  0xd2   :  { %914 = vrcp.f32 %v232_v20  ;;  %v244_v24 = vand.u32 2147483648, %v232_v20  ;;  %v242_v26 = vand.u32 2147483647, %v232_v20  ;;  %vm238_vm5 = vweird.f32 %v232_v20 }
  0xd3   :  { %916 = vtanh.f32 %v228_v16 }
  0xd4   :  { %v245_v28 = vor.u32 1.1754944e-38, %v244_v24  ;;  %vm243_vm7 = vcmp.eq.f32.partialorder %v242_v26, 8.507059e+37 }
  0xd8   :  { %v915_v21 = vpop.eup %914 }
  0xd9   :  { %v234_v22 = vmul.f32 %v915_v21, %v232_v20  ;;  %vm239_vm4 = vweird.f32 %v915_v21  ;;  %v917_v31 = vpop.eup %916 }
  0xda   :  { %vm240_vm6 = vmor %vm238_vm5, %vm239_vm4 }
  0xdb   :  { %v235_v23 = vsub.f32 1.0, %v234_v22 }
  0xdd   :  { %v236_v25 = vmul.f32 %v915_v21, %v235_v23 }
  0xdf   :  { %v237_v27 = vadd.f32 %v915_v21, %v236_v25 }
  0xe1   :  { %v241_v29 = vsel %vm240_vm6, %v915_v21, %v237_v27 }
  0xe2   :  { %v246_v30 = vsel %vm243_vm7, %v245_v28, %v241_v29 }
  0xe3   :  { %253 = vrot.lane.b32.xlu1 %v246_v30, %s981_s3  ;;  %249 = vrot.lane.b32.xlu0 %v246_v30, %s982_s20 }
  0xeb   :  { %251 = vrot.lane.b32.xlu0 %v917_v31, %s983_s21 }
 0x138   :  { %v163_v8 = vpop.f32.mrf.mxu0 }
 0x139   :  { %v164_v16 = vadd.f32 %v1116_v0, %v163_v8 }
 0x140   :  { %v165_v17 = vpop.f32.mrf.mxu0 }
 0x141   :  { %v166_v18 = vadd.f32 %v1116_v0, %v165_v17 }
 0x143   :  { %v883_v19 = vpack.c.bf16 %v166_v18, %v164_v16 }
 0x145   :  { %898 = vst [vmem:[#allocation2 + $0x8] sm:$0xff] %v883_v19  }
 0x14c   :  { %v313_v20 = vld [vmem:[#allocation2 + $0x8] sm:$0xff]  }
 0x14d   :  { %v314_v21 = vunpack.c.l.bf16 %v313_v20 }
 0x155   :  { %v250_v32 = vpop.permute.xlu0 %249  ;;  %v254_v40 = vpop.permute.xlu1 %253 }
 0x156   :  { %v255_v34 = vmul.f32 0.0, %v250_v32 }
 0x15d   :  { %v252_v33 = vpop.permute.xlu0 %251 }
 0x15e   :  { %v256_v35 = vmul.f32 %v252_v33, %v246_v30 }
 0x160   :  { %v257_v37 = vadd.f32 %v256_v35, %v255_v34 }
 0x162   :  { %918 = vtanh.f32 %v257_v37 }
 0x168   :  { %v919_v39 = vpop.eup %918 }
 0x169   :  { %v259_v41 = vmul.f32 %v919_v39, %v254_v40 }
 0x16b   :  { %v263_v42 = vpack.c.bf16 %v259_v41, %v259_v41 }
 0x16d   :  { %789 = vmatmul.msk.bf16.vlgmr.msra.gmra.mxu2 %vm54_vm0, %v263_v42 }
 0x16e   :  { %585 = vmatpush.bf16.msra.mxu2 %v1082_v36 }
 0x172   :  { %586 = vmatpush.bf16.msra.mxu2 %v1088_v38 }
 0x1f0   :  { %v276_v44 = vpop.f32.mrf.mxu2 }
 0x1f1   :  { %v280_v45 = vadd.f32 %v276_v44, %v262_v43 }
 0x1f3   :  { %v790_v47 = vmul.f32 -1.442695, %v280_v45  ;;  %920 = vtanh.f32 %v280_v45 }
 0x1f5   :  { %922 = vpow2.f32 %v790_v47 }
 0x1f8   :  { %v278_v48 = vpop.f32.mrf.mxu2 }
 0x1f9   :  { %v921_v49 = vpop.eup %920 }
 0x1fa   :  { %303 = vrot.lane.b32.xlu2 %v921_v49, %s983_s21 }
 0x1fb   :  { %v923_v50 = vpop.eup %922 }
 0x1fc   :  { %v284_v51 = vadd.f32 1.0, %v923_v50 }
 0x1fe   :  { %924 = vrcp.f32 %v284_v51  ;;  %v296_v55 = vand.u32 2147483648, %v284_v51  ;;  %v294_v38 = vand.u32 2147483647, %v284_v51  ;;  %vm290_vm9 = vweird.f32 %v284_v51 }
 0x200   :  { %v297_v57 = vor.u32 1.1754944e-38, %v296_v55  ;;  %vm295_vm11 = vcmp.eq.f32.partialorder %v294_v38, 8.507059e+37 }
 0x204   :  { %v925_v52 = vpop.eup %924 }
 0x205   :  { %v286_v53 = vmul.f32 %v925_v52, %v284_v51  ;;  %vm291_vm8 = vweird.f32 %v925_v52  ;;  %v366_v51 = vunpack.c.h.bf16 %v313_v20 }
 0x206   :  { %vm292_vm10 = vmor %vm290_vm9, %vm291_vm8 }
 0x207   :  { %v287_v54 = vsub.f32 1.0, %v286_v53 }
 0x209   :  { %v288_v36 = vmul.f32 %v925_v52, %v287_v54 }
 0x20b   :  { %v289_v56 = vadd.f32 %v925_v52, %v288_v36 }
 0x20d   :  { %v293_v58 = vsel %vm292_vm10, %v925_v52, %v289_v56 }
 0x20e   :  { %v298_v59 = vsel %vm295_vm11, %v297_v57, %v293_v58 }
 0x20f   :  { %305 = vrot.lane.b32.xlu2 %v298_v59, %s981_s3  ;;  %301 = vrot.lane.b32.xlu1 %v298_v59, %s982_s20 }
 0x254   :  { %v304_v4 = vpop.permute.xlu2 %303 }
 0x255   :  { %v308_v6 = vmul.f32 %v304_v4, %v298_v59  ;;  %v90_v4 = vmul.f32 %v1052_v9, %v1099_v46 }
 0x269   :  { %v306_v14 = vpop.permute.xlu2 %305 }
 0x281   :  { %v302_v5 = vpop.permute.xlu1 %301 }
 0x282   :  { %v307_v10 = vmul.f32 %v302_v5, %v257_v37  ;;  %v91_v5 = vmul.f32 %v1057_v11, %v1099_v46 }
 0x284   :  { %v309_v12 = vadd.f32 %v308_v6, %v307_v10  ;;  %v98_v6 = vpack.c.bf16 %v90_v4, %v90_v4  ;;  %v99_v10 = vpack.c.bf16 %v91_v5, %v91_v5 }
 0x286   :  { %926 = vtanh.f32 %v309_v12 }
 0x28c   :  { %v927_v13 = vpop.eup %926 }
 0x28d   :  { %v311_v15 = vmul.f32 %v927_v13, %v306_v14  ;;  %v118_v13 = vunpack.c.l.b16 %v99_v10 }
 0x28f   :  { %v315_v7 = vpack.c.bf16 %v311_v15, %v311_v15 }
 0x291   :  { %791 = vmatmul.msk.bf16.vlgmr.msra.gmra.mxu3 %vm54_vm0, %v315_v7 }
 0x314   :  { %v328_v22 = vpop.f32.mrf.mxu3 }
 0x315   :  { %v332_v23 = vadd.f32 %v328_v22, %v314_v21 }
 0x317   :  { %v792_v24 = vmul.f32 -1.442695, %v332_v23  ;;  %928 = vtanh.f32 %v332_v23 }
 0x319   :  { %930 = vpow2.f32 %v792_v24 }
 0x31c   :  { %v330_v25 = vpop.f32.mrf.mxu3 }
 0x31d   :  { %v929_v26 = vpop.eup %928 }
 0x31e   :  { %355 = vrot.lane.b32.xlu1 %v929_v26, %s983_s21 }
 0x31f   :  { %v931_v27 = vpop.eup %930 }
 0x320   :  { %v336_v28 = vadd.f32 1.0, %v931_v27 }
 0x322   :  { %932 = vrcp.f32 %v336_v28  ;;  %v348_v32 = vand.u32 2147483648, %v336_v28  ;;  %v346_v34 = vand.u32 2147483647, %v336_v28  ;;  %vm342_vm13 = vweird.f32 %v336_v28 }
 0x324   :  { %v349_v37 = vor.u32 1.1754944e-38, %v348_v32  ;;  %vm347_vm15 = vcmp.eq.f32.partialorder %v346_v34, 8.507059e+37 }
 0x328   :  { %v933_v29 = vpop.eup %932 }
 0x329   :  { %v338_v30 = vmul.f32 %v933_v29, %v336_v28  ;;  %vm343_vm12 = vweird.f32 %v933_v29 }
 0x32a   :  { %vm344_vm14 = vmor %vm342_vm13, %vm343_vm12 }
 0x32b   :  { %v339_v31 = vsub.f32 1.0, %v338_v30 }
 0x32d   :  { %v340_v33 = vmul.f32 %v933_v29, %v339_v31 }
 0x32f   :  { %v341_v35 = vadd.f32 %v933_v29, %v340_v33 }
 0x331   :  { %v345_v39 = vsel %vm344_vm14, %v933_v29, %v341_v35 }
 0x332   :  { %v350_v40 = vsel %vm347_vm15, %v349_v37, %v345_v39 }
 0x333   :  { %357 = vrot.lane.b32.xlu2 %v350_v40, %s981_s3  ;;  %353 = vrot.lane.b32.xlu0 %v350_v40, %s982_s20 }
 0x38d   :  { %v358_v48 = vpop.permute.xlu2 %357 }
 0x390   :  { %v356_v41 = vpop.permute.xlu1 %355 }
 0x391   :  { %v360_v43 = vmul.f32 %v356_v41, %v350_v40 }
 0x3a5   :  { %v354_v42 = vpop.permute.xlu0 %353 }
 0x3a6   :  { %v359_v44 = vmul.f32 %v354_v42, %v309_v12  ;;  %v117_v12 = vunpack.c.l.b16 %v98_v6 }
 0x3a8   :  { %v361_v45 = vadd.f32 %v360_v43, %v359_v44  ;;  %v123_v14 = vpack.c.b16 %v118_v13, %v117_v12 }
 0x3aa   :  { %934 = vtanh.f32 %v361_v45  ;;  %778 = vmatmul.msk.bf16.gmra.mxu0 %vm54_vm0, %v123_v14 }
 0x3b0   :  { %v935_v47 = vpop.eup %934 }
 0x3b1   :  { %v363_v49 = vmul.f32 %v935_v47, %v358_v48 }
 0x3b3   :  { %v367_v50 = vpack.c.bf16 %v363_v49, %v363_v49 }
 0x3b5   :  { %793 = vmatmul.msk.bf16.vlgmr.msra.gmra.mxu1 %vm54_vm0, %v367_v50 }
 0x427   :  { %v168_v11 = vpop.f32.mrf.mxu0 }
 0x428   :  { %v169_v46 = vadd.f32 %v1116_v0, %v168_v11 }
 0x42f   :  { %v170_v21 = vpop.f32.mrf.mxu0 }
 0x430   :  { %v171_v22 = vadd.f32 %v1116_v0, %v170_v21 }
 0x432   :  { %v380_v52 = vpop.f32.mrf.mxu1  ;;  %v888_v23 = vpack.c.bf16 %v171_v22, %v169_v46 }
 0x433   :  { %v384_v53 = vadd.f32 %v380_v52, %v366_v51 }
 0x434   :  { %899 = vst [vmem:[#allocation2 + $0x10] sm:$0xff] %v888_v23  }
 0x435   :  { %v794_v54 = vmul.f32 -1.442695, %v384_v53  ;;  %936 = vtanh.f32 %v384_v53 }
 0x437   :  { %938 = vpow2.f32 %v794_v54 }
 0x43a   :  { %v382_v55 = vpop.f32.mrf.mxu1 }
 0x43b   :  { %v937_v36 = vpop.eup %936  ;;  %v417_v24 = vld [vmem:[#allocation2 + $0x10] sm:$0xff]  }
 0x43c   :  { %407 = vrot.lane.b32.xlu1 %v937_v36, %s983_s21  ;;  %v418_v25 = vunpack.c.l.bf16 %v417_v24  ;;  %v470_v54 = vunpack.c.h.bf16 %v417_v24 }
 0x43d   :  { %v939_v38 = vpop.eup %938 }
 0x43e   :  { %v388_v56 = vadd.f32 1.0, %v939_v38 }
 0x440   :  { %940 = vrcp.f32 %v388_v56  ;;  %v400_v60 = vand.u32 2147483648, %v388_v56  ;;  %v398_v62 = vand.u32 2147483647, %v388_v56  ;;  %vm394_vm2 = vweird.f32 %v388_v56 }
 0x442   :  { %v401_v1 = vor.u32 1.1754944e-38, %v400_v60  ;;  %vm399_vm4 = vcmp.eq.f32.partialorder %v398_v62, 8.507059e+37 }
 0x446   :  { %v941_v57 = vpop.eup %940 }
 0x447   :  { %v390_v58 = vmul.f32 %v941_v57, %v388_v56  ;;  %vm395_vm1 = vweird.f32 %v941_v57 }
 0x448   :  { %vm396_vm3 = vmor %vm394_vm2, %vm395_vm1 }
 0x449   :  { %v391_v59 = vsub.f32 1.0, %v390_v58 }
 0x44b   :  { %v392_v61 = vmul.f32 %v941_v57, %v391_v59 }
 0x44d   :  { %v393_v63 = vadd.f32 %v941_v57, %v392_v61 }
 0x44f   :  { %v397_v2 = vsel %vm396_vm3, %v941_v57, %v393_v63 }
 0x450   :  { %v402_v3 = vsel %vm399_vm4, %v401_v1, %v397_v2 }
 0x451   :  { %409 = vrot.lane.b32.xlu2 %v402_v3, %s981_s3  ;;  %405 = vrot.lane.b32.xlu0 %v402_v3, %s982_s20 }
 0x4ab   :  { %v410_v19 = vpop.permute.xlu2 %409 }
 0x4ae   :  { %v408_v15 = vpop.permute.xlu1 %407 }
 0x4af   :  { %v412_v8 = vmul.f32 %v408_v15, %v402_v3 }
 0x4c3   :  { %v406_v7 = vpop.permute.xlu0 %405 }
 0x4c4   :  { %v411_v16 = vmul.f32 %v406_v7, %v361_v45 }
 0x4c6   :  { %v413_v17 = vadd.f32 %v412_v8, %v411_v16 }
 0x4c8   :  { %942 = vtanh.f32 %v413_v17 }
 0x4ce   :  { %v943_v18 = vpop.eup %942 }
 0x4cf   :  { %v415_v20 = vmul.f32 %v943_v18, %v410_v19  ;;  %v521_v18 = vld [vmem:[#allocation2 + $0x18] sm:$0xff]  }
 0x4d0   :  { %v522_v19 = vunpack.c.l.bf16 %v521_v18 }
 0x4d1   :  { %v419_v9 = vpack.c.bf16 %v415_v20, %v415_v20 }
 0x4d3   :  { %795 = vmatmul.msk.bf16.vlgmr.msrb.gmra.mxu2 %vm54_vm0, %v419_v9 }
 0x556   :  { %v432_v26 = vpop.f32.mrf.mxu2 }
 0x557   :  { %v436_v27 = vadd.f32 %v432_v26, %v418_v25 }
 0x559   :  { %v796_v28 = vmul.f32 -1.442695, %v436_v27  ;;  %944 = vtanh.f32 %v436_v27 }
 0x55b   :  { %946 = vpow2.f32 %v796_v28 }
 0x55e   :  { %v434_v29 = vpop.f32.mrf.mxu2 }
 0x55f   :  { %v945_v30 = vpop.eup %944 }
 0x560   :  { %459 = vrot.lane.b32.xlu1 %v945_v30, %s983_s21 }
 0x561   :  { %v947_v31 = vpop.eup %946 }
 0x562   :  { %v440_v32 = vadd.f32 1.0, %v947_v31 }
 0x564   :  { %948 = vrcp.f32 %v440_v32  ;;  %v452_v0 = vand.u32 2147483648, %v440_v32  ;;  %v450_v39 = vand.u32 2147483647, %v440_v32  ;;  %vm446_vm6 = vweird.f32 %v440_v32 }
 0x566   :  { %v453_v41 = vor.u32 1.1754944e-38, %v452_v0  ;;  %vm451_vm8 = vcmp.eq.f32.partialorder %v450_v39, 8.507059e+37 }
 0x56a   :  { %v949_v33 = vpop.eup %948 }
 0x56b   :  { %v442_v34 = vmul.f32 %v949_v33, %v440_v32  ;;  %vm447_vm5 = vweird.f32 %v949_v33 }
 0x56c   :  { %vm448_vm7 = vmor %vm446_vm6, %vm447_vm5 }
 0x56d   :  { %v443_v35 = vsub.f32 1.0, %v442_v34 }
 0x56f   :  { %v444_v37 = vmul.f32 %v949_v33, %v443_v35 }
 0x571   :  { %v445_v40 = vadd.f32 %v949_v33, %v444_v37 }
 0x573   :  { %v449_v42 = vsel %vm448_vm7, %v949_v33, %v445_v40 }
 0x574   :  { %v454_v43 = vsel %vm451_vm8, %v453_v41, %v449_v42 }
 0x575   :  { %461 = vrot.lane.b32.xlu2 %v454_v43, %s981_s3  ;;  %457 = vrot.lane.b32.xlu0 %v454_v43, %s982_s20 }
 0x5cf   :  { %v462_v51 = vpop.permute.xlu2 %461 }
 0x5d2   :  { %v460_v44 = vpop.permute.xlu1 %459 }
 0x5d3   :  { %v464_v47 = vmul.f32 %v460_v44, %v454_v43  ;;  %v574_v44 = vunpack.c.h.bf16 %v521_v18  ;;  %v851_v18 = vld [vmem:[%s1215_s6] sm:$0xff] }
 0x5e7   :  { %v458_v45 = vpop.permute.xlu0 %457 }
 0x5e8   :  { %v463_v48 = vmul.f32 %v458_v45, %v413_v17 }
 0x5ea   :  { %v465_v49 = vadd.f32 %v464_v47, %v463_v48 }
 0x5ec   :  { %950 = vtanh.f32 %v465_v49 }
 0x5f2   :  { %v951_v50 = vpop.eup %950 }
 0x5f3   :  { %v467_v52 = vmul.f32 %v951_v50, %v462_v51 }
 0x5f5   :  { %v471_v53 = vpack.c.bf16 %v467_v52, %v467_v52 }
 0x5f7   :  { %797 = vmatmul.msk.bf16.vlgmr.msrb.gmra.mxu3 %vm54_vm0, %v471_v53 }
 0x67a   :  { %v484_v55 = vpop.f32.mrf.mxu3 }
 0x67b   :  { %v488_v36 = vadd.f32 %v484_v55, %v470_v54 }
 0x67d   :  { %v798_v38 = vmul.f32 -1.442695, %v488_v36  ;;  %952 = vtanh.f32 %v488_v36 }
 0x67f   :  { %954 = vpow2.f32 %v798_v38 }
 0x682   :  { %v486_v56 = vpop.f32.mrf.mxu3 }
 0x683   :  { %v953_v57 = vpop.eup %952 }
 0x684   :  { %511 = vrot.lane.b32.xlu1 %v953_v57, %s983_s21 }
 0x685   :  { %v955_v58 = vpop.eup %954 }
 0x686   :  { %v492_v59 = vadd.f32 1.0, %v955_v58 }
 0x688   :  { %956 = vrcp.f32 %v492_v59  ;;  %v504_v63 = vand.u32 2147483648, %v492_v59  ;;  %v502_v2 = vand.u32 2147483647, %v492_v59  ;;  %vm498_vm10 = vweird.f32 %v492_v59 }
 0x68a   :  { %v505_v4 = vor.u32 1.1754944e-38, %v504_v63  ;;  %vm503_vm12 = vcmp.eq.f32.partialorder %v502_v2, 8.507059e+37  ;;  %v858_v63 = vld [vmem:[%s1215_s6 + $0x38] sm:$0xff]  ;;  %v856_v2 = vld [vmem:[%s1215_s6 + $0x28] sm:$0xff] }
 0x68b   :  { %731 = vmatpush.bf16.msrb.mxu0 %v858_v63 }
 0x68e   :  { %v957_v60 = vpop.eup %956 }
 0x68f   :  { %v494_v61 = vmul.f32 %v957_v60, %v492_v59  ;;  %vm499_vm9 = vweird.f32 %v957_v60 }
 0x690   :  { %vm500_vm11 = vmor %vm498_vm10, %vm499_vm9 }
 0x691   :  { %v495_v62 = vsub.f32 1.0, %v494_v61  ;;  %v850_v61 = vld [vmem:[%s1214_s4 + $0x8] sm:$0xff] }
 0x692   :  { %654 = vmatpush.bf16.msra.mxu3 %v850_v61 }
 0x693   :  { %v496_v1 = vmul.f32 %v957_v60, %v495_v62  ;;  %v849_v62 = vld [vmem:[%s1214_s4] sm:$0xff] }
 0x695   :  { %v497_v3 = vadd.f32 %v957_v60, %v496_v1  ;;  %v857_v1 = vld [vmem:[%s1215_s6 + $0x30] sm:$0xff] }
 0x696   :  { %655 = vmatpush.bf16.msra.mxu3 %v849_v62  ;;  %732 = vmatpush.bf16.msrb.mxu0 %v857_v1 }
 0x697   :  { %v501_v5 = vsel %vm500_vm11, %v957_v60, %v497_v3  ;;  %v855_v3 = vld [vmem:[%s1215_s6 + $0x20] sm:$0xff] }
 0x698   :  { %v506_v6 = vsel %vm503_vm12, %v505_v4, %v501_v5  ;;  %v854_v5 = vld [vmem:[%s1215_s6 + $0x18] sm:$0xff] }
 0x699   :  { %513 = vrot.lane.b32.xlu2 %v506_v6, %s981_s3  ;;  %509 = vrot.lane.b32.xlu0 %v506_v6, %s982_s20 }
 0x69a   :  { %733 = vmatpush.bf16.msrb.mxu0 %v856_v2 }
 0x69e   :  { %734 = vmatpush.bf16.msrb.mxu0 %v855_v3 }
 0x6a2   :  { %735 = vmatpush.bf16.msrb.mxu0 %v854_v5 }
 0x6f3   :  { %v514_v8 = vpop.permute.xlu2 %513 }
 0x6f6   :  { %v512_v10 = vpop.permute.xlu1 %511 }
 0x6f7   :  { %v516_v13 = vmul.f32 %v512_v10, %v506_v6 }
 0x70b   :  { %v510_v12 = vpop.permute.xlu0 %509 }
 0x70c   :  { %v515_v14 = vmul.f32 %v510_v12, %v465_v49 }
 0x70e   :  { %v517_v15 = vadd.f32 %v516_v13, %v515_v14  ;;  %v853_v13 = vld [vmem:[%s1215_s6 + $0x10] sm:$0xff] }
 0x70f   :  { %736 = vmatpush.bf16.msrb.mxu0 %v853_v13 }
 0x710   :  { %958 = vtanh.f32 %v517_v15 }
 0x716   :  { %v959_v7 = vpop.eup %958 }
 0x717   :  { %v519_v16 = vmul.f32 %v959_v7, %v514_v8 }
 0x719   :  { %v523_v17 = vpack.c.bf16 %v519_v16, %v519_v16 }
 0x71b   :  { %799 = vmatmul.msk.bf16.vlgmr.msrb.gmra.mxu1 %vm54_vm0, %v523_v17 }
 0x798   :  { %v536_v20 = vpop.f32.mrf.mxu1 }
 0x799   :  { %v540_v9 = vadd.f32 %v536_v20, %v522_v19  ;;  %v908_v19 = vld [vmem:[%s1213_s5] ss:$0 sm:$0xff] }
 0x79b   :  { %v800_v11 = vmul.f32 -1.442695, %v540_v9  ;;  %960 = vtanh.f32 %v540_v9 }
 0x79d   :  { %962 = vpow2.f32 %v800_v11 }
 0x7a0   :  { %v538_v46 = vpop.f32.mrf.mxu1 }
 0x7a1   :  { %v961_v21 = vpop.eup %960 }
 0x7a2   :  { %563 = vrot.lane.b32.xlu1 %v961_v21, %s983_s21 }
 0x7a3   :  { %v963_v22 = vpop.eup %962 }
 0x7a4   :  { %v544_v23 = vadd.f32 1.0, %v963_v22  ;;  %v909_v22 = vld [vmem:[%s1216_s7] ss:$0 sm:$0xff] }
 0x7a6   :  { %964 = vrcp.f32 %v544_v23  ;;  %v556_v27 = vand.u32 2147483648, %v544_v23  ;;  %v554_v29 = vand.u32 2147483647, %v544_v23  ;;  %vm550_vm14 = vweird.f32 %v544_v23 }
 0x7a8   :  { %v557_v31 = vor.u32 1.1754944e-38, %v556_v27  ;;  %vm555_vm1 = vcmp.eq.f32.partialorder %v554_v29, 8.507059e+37 }
 0x7ac   :  { %v965_v24 = vpop.eup %964 }
 0x7ad   :  { %v546_v25 = vmul.f32 %v965_v24, %v544_v23  ;;  %vm551_vm13 = vweird.f32 %v965_v24 }
 0x7ae   :  { %vm552_vm15 = vmor %vm550_vm14, %vm551_vm13 }
 0x7af   :  { %v547_v26 = vsub.f32 1.0, %v546_v25 }
 0x7b1   :  { %v548_v28 = vmul.f32 %v965_v24, %v547_v26 }
 0x7b3   :  { %v549_v30 = vadd.f32 %v965_v24, %v548_v28 }
 0x7b5   :  { %v553_v32 = vsel %vm552_vm15, %v965_v24, %v549_v30 }
 0x7b6   :  { %v558_v33 = vsel %vm555_vm1, %v557_v31, %v553_v32 }
 0x7b7   :  { %565 = vrot.lane.b32.xlu2 %v558_v33, %s981_s3  ;;  %561 = vrot.lane.b32.xlu0 %v558_v33, %s982_s20 }
 0x811   :  { %v566_v41 = vpop.permute.xlu2 %565 }
 0x814   :  { %v564_v34 = vpop.permute.xlu1 %563 }
 0x815   :  { %v568_v0 = vmul.f32 %v564_v34, %v558_v33 }
 0x829   :  { %v562_v35 = vpop.permute.xlu0 %561 }
 0x82a   :  { %v567_v37 = vmul.f32 %v562_v35, %v517_v15  ;;  %v852_v15 = vld [vmem:[%s1215_s6 + $0x8] sm:$0xff] }
 0x82b   :  { %737 = vmatpush.bf16.msrb.mxu0 %v852_v15 }
 0x82c   :  { %v569_v39 = vadd.f32 %v568_v0, %v567_v37 }
 0x82e   :  { %966 = vtanh.f32 %v569_v39 }
 0x82f   :  { %738 = vmatpush.bf16.msrb.mxu0 %v851_v18 }
 0x834   :  { %v967_v40 = vpop.eup %966 }
 0x835   :  { %v571_v42 = vmul.f32 %v967_v40, %v566_v41 }
 0x837   :  { %v575_v43 = vpack.c.bf16 %v571_v42, %v571_v42 }
 0x839   :  { %801 = vmatmul.msk.bf16.vlgmr.msra.gmra.mxu2 %vm54_vm0, %v575_v43 }
 0x8bc   :  { %v588_v45 = vpop.f32.mrf.mxu2 }
 0x8bd   :  { %v592_v47 = vadd.f32 %v588_v45, %v574_v44 }
 0x8bf   :  { %v802_v48 = vmul.f32 -1.442695, %v592_v47  ;;  %968 = vtanh.f32 %v592_v47 }
 0x8c1   :  { %970 = vpow2.f32 %v802_v48 }
 0x8c4   :  { %v590_v49 = vpop.f32.mrf.mxu2 }
 0x8c5   :  { %v969_v50 = vpop.eup %968 }
 0x8c6   :  { %615 = vrot.lane.b32.xlu1 %v969_v50, %s983_s21 }
 0x8c7   :  { %v971_v51 = vpop.eup %970 }
 0x8c8   :  { %v596_v52 = vadd.f32 1.0, %v971_v51 }
 0x8ca   :  { %972 = vrcp.f32 %v596_v52  ;;  %v608_v36 = vand.u32 2147483648, %v596_v52  ;;  %v606_v56 = vand.u32 2147483647, %v596_v52  ;;  %vm602_vm3 = vweird.f32 %v596_v52 }
 0x8cc   :  { %v609_v58 = vor.u32 1.1754944e-38, %v608_v36  ;;  %vm607_vm5 = vcmp.eq.f32.partialorder %v606_v56, 8.507059e+37 }
 0x8d0   :  { %v973_v53 = vpop.eup %972 }
 0x8d1   :  { %v598_v54 = vmul.f32 %v973_v53, %v596_v52  ;;  %vm603_vm2 = vweird.f32 %v973_v53 }
 0x8d2   :  { %vm604_vm4 = vmor %vm602_vm3, %vm603_vm2 }
 0x8d3   :  { %v599_v55 = vsub.f32 1.0, %v598_v54 }
 0x8d5   :  { %v600_v38 = vmul.f32 %v973_v53, %v599_v55 }
 0x8d7   :  { %v601_v57 = vadd.f32 %v973_v53, %v600_v38 }
 0x8d9   :  { %v605_v59 = vsel %vm604_vm4, %v973_v53, %v601_v57 }
 0x8da   :  { %v610_v60 = vsel %vm607_vm5, %v609_v58, %v605_v59 }
 0x8db   :  { %617 = vrot.lane.b32.xlu2 %v610_v60, %s981_s3  ;;  %613 = vrot.lane.b32.xlu0 %v610_v60, %s982_s20 }
 0x935   :  { %v618_v8 = vpop.permute.xlu2 %617 }
 0x938   :  { %v616_v4 = vpop.permute.xlu1 %615 }
 0x939   :  { %v620_v10 = vmul.f32 %v616_v4, %v610_v60 }
 0x94d   :  { %v614_v6 = vpop.permute.xlu0 %613 }
 0x94e   :  { %v619_v12 = vmul.f32 %v614_v6, %v569_v39 }
 0x950   :  { %v621_v14 = vadd.f32 %v620_v10, %v619_v12 }
 0x952   :  { %974 = vtanh.f32 %v621_v14 }
 0x958   :  { %v975_v7 = vpop.eup %974 }
 0x959   :  { %v623_v16 = vmul.f32 %v975_v7, %v618_v8 }
 0x95b   :  { %v624_v17 = vpack.c.bf16 %v623_v16, %v623_v16 }
 0x95d   :  { %811 = vmatmul.msk.bf16.vlgmr.msra.gmra.mxu3 %vm54_vm0, %v624_v17 }
 0x9e0   :  { %v657_v20 = vpop.f32.mrf.mxu3 }
 0x9e1   :  { %v658_v9 = vadd.f32 %v908_v19, %v657_v20 }
 0x9e3   :  { %v661_v11 = vmax.f32 %v658_v9, 0.0 }
 0x9e5   :  { %v662_v46 = vpack.c.bf16 %v661_v11, %v661_v11 }
 0x9e7   :  { %739 = vmatmul.bf16.vlgmr.msrb.gmra.mxu0 %v662_v46 }
 0x9e8   :  { %v659_v21 = vpop.f32.mrf.mxu3 }
 0xa64   :  { %v740_v23 = vpop.f32.mrf.mxu0 }
 0xa65   :  { %v741_v24 = vadd.f32 %v909_v22, %v740_v23 }
 0xa67   :  { %v844_v25 = vmul.f32 -1.442695, %v741_v24 }
 0xa69   :  { %976 = vpow2.f32 %v844_v25 }
 0xa6c   :  { %v742_v26 = vpop.f32.mrf.mxu0 }
 0xa6f   :  { %v977_v27 = vpop.eup %976 }
 0xa70   :  { %v747_v28 = vadd.f32 1.0, %v977_v27 }
 0xa72   :  { %978 = vrcp.f32 %v747_v28  ;;  %v759_v32 = vand.u32 2147483648, %v747_v28  ;;  %v757_v34 = vand.u32 2147483647, %v747_v28  ;;  %vm753_vm6 = vweird.f32 %v747_v28 }
 0xa74   :  { %v760_v0 = vor.u32 1.1754944e-38, %v759_v32  ;;  %vm758_vm8 = vcmp.eq.f32.partialorder %v757_v34, 8.507059e+37 }
 0xa78   :  { %v979_v29 = vpop.eup %978 }
 0xa79   :  { %v749_v30 = vmul.f32 %v979_v29, %v747_v28  ;;  %vm754_vm0 = vweird.f32 %v979_v29 }
 0xa7a   :  { %vm755_vm7 = vmor %vm753_vm6, %vm754_vm0 }
 0xa7b   :  { %v750_v31 = vsub.f32 1.0, %v749_v30 }
 0xa7d   :  { %v751_v33 = vmul.f32 %v979_v29, %v750_v31 }
 0xa7f   :  { %v752_v35 = vadd.f32 %v979_v29, %v751_v33 }
 0xa81   :  { %v756_v37 = vsel %vm755_vm7, %v979_v29, %v752_v35 }
 0xa82   :  { %v761_v39 = vsel %vm758_vm8, %v760_v0, %v756_v37 }
 0xa83   :  { %763 = vst [vmem:[%s1217_s8] sm:$0xff] %v761_v39 }

</bundles_post_ra>
